<compile_context>
chip_gen: v7x
topology: tpu7x:2x2x1
jax: 0.10.0
libtpu: 0.0.40
codegen_flags: <defaults>
</compile_context>

<pallas_src>
import jax
import jax.numpy as jnp
from jax.experimental import pallas as pl
from jax.experimental.pallas import tpu as pltpu


def _cdiv(a, b):
    return -(-a // b)


# ----------------------------------------------------------------------------- kernels
def _scoring_kernel_fused(img_ref, art_ref, w1_ref, b1_ref, w2_ref, b2_ref, o_ref):
    """v6e/v7x path: one K=2E matmul (fills the 256-deep MXU)."""
    dt = w1_ref.dtype
    # Concat along the lane axis; E is a multiple of 128 -> plain vreg copy, no shuffle.
    x = jnp.concatenate([img_ref[...].astype(dt), art_ref[...].astype(dt)], axis=1)
    h = jnp.dot(x, w1_ref[...], preferred_element_type=jnp.float32)
    h = jnp.maximum(h + b1_ref[...], 0.0)                      # bias + ReLU on the VPU
    # Second layer: broadcast-mul (VPU) + lane reduce (XLU) instead of a 1-wide MXU pass.
    s = jnp.sum(h * w2_ref[...], axis=-1)                      # (bm,)
    o_ref[0, :] = s + b2_ref[0]                                # lane-dense (1, bm) store


def _scoring_kernel_split(img_ref, art_ref, w1i_ref, w1a_ref, b1_ref, w2_ref, b2_ref,
                          o_ref):
    """v5e path: two K=E matmuls (128-deep MXU already full at K=128)."""
    dt = w1i_ref.dtype
    h = jnp.dot(img_ref[...].astype(dt), w1i_ref[...], preferred_element_type=jnp.float32)
    h = h + jnp.dot(art_ref[...].astype(dt), w1a_ref[...], preferred_element_type=jnp.float32)
    h = jnp.maximum(h + b1_ref[...], 0.0)
    s = jnp.sum(h * w2_ref[...], axis=-1)
    o_ref[0, :] = s + b2_ref[0]


# ------------------------------------------------------------------- one-time weight prep
def _is_v5e():
    try:
        kind = jax.devices()[0].device_kind.lower()
    except Exception:
        return False
    return ("v5 lite" in kind) or ("v5e" in kind) or ("v5litepod" in kind)


def prepare_params(w1, b1, w2, b2, *, matmul_dtype=None, force_split=None):
    """One-time (model-load) layout conversion; keep OUT of the per-call hot path.

    w1 : (2E, H)  -> whole (v6e/v7x, fused K=2E) or img/art halves (v5e, split K=E)
    b1 : (H,)     -> (1, H) row for broadcast add
    w2 : (H, 1)   -> (1, H) row for broadcast-mul + lane-reduce
    b2 : (1,)     -> (1,)   SMEM scalar
    matmul_dtype  : set to jnp.bfloat16 for ~4x MXU throughput (re-validate tolerance).
    """
    two_e, H = w1.shape
    E = two_e // 2
    split = _is_v5e() if force_split is None else force_split
    wdt = jnp.dtype(w1.dtype) if matmul_dtype is None else jnp.dtype(matmul_dtype)
    if split:
        w1_parts = (jnp.asarray(w1[:E, :], wdt), jnp.asarray(w1[E:, :], wdt))
    else:
        w1_parts = (jnp.asarray(w1, wdt),)
    return (split,
            w1_parts,
            jnp.asarray(b1, jnp.float32).reshape(1, H),
            jnp.asarray(w2, jnp.float32).reshape(1, H),
            jnp.asarray(b2, jnp.float32).reshape(1))


# ------------------------------------------------------------------------------ wrapper
def _pick_tile(B):
    """Batch tile bm and padded batch Bp."""
    if B <= 256:
        return B, B                      # single step; launch overhead dominates anyway
    # Big tiles amortize the ~0.35us/step pipeline overhead (sweet spot ~512-1024 rows);
    # cap at 1024 and force the grid to have >= 2 steps so the "parallel" axis can shard
    # across the two v7x TensorCores for mid-size batches.
    bm = min(1024, _cdiv(_cdiv(B, 2), 128) * 128)
    Bp = _cdiv(B, bm) * bm
    return bm, Bp


def scoring_model(img_emb, art_emb, params):
    """Pallas equivalent of ScoringModel.forward. Returns (B,) float32 scores."""
    split, w1_parts, b1_row, w2_row, b2_vec = params
    B, E = img_emb.shape
    H = b1_row.shape[1]

    bm, Bp = _pick_tile(B)
    if Bp != B:
        # Arbitrary serving batch sizes: zero-pad up to the tile, slice back below.
        img_emb = jnp.pad(img_emb, ((0, Bp - B), (0, 0)))
        art_emb = jnp.pad(art_emb, ((0, Bp - B), (0, 0)))
    grid = (Bp // bm,)

    act_spec = pl.BlockSpec((bm, E), lambda i: (i, 0))              # blocked over batch
    def pinned(shape):                                              # resident weights
        return pl.BlockSpec(shape, lambda i: (0, 0))

    if split:
        kernel = _scoring_kernel_split
        w_specs = [pinned((E, H)), pinned((E, H))]
    else:
        kernel = _scoring_kernel_fused
        w_specs = [pinned((2 * E, H))]

    wbytes = sum(int(w.size) * w.dtype.itemsize for w in w1_parts)
    flops = 2 * Bp * (2 * E) * H + 4 * Bp * H                       # matmul + bias/relu/reduce
    bytes_accessed = 4 * (2 * Bp * E + 2 * H + 1 + Bp) + wbytes

    # TODO(synk): if an xprof trace on v5e shows exposed activation DMA at this bm, add
    # pipeline_mode=pl.Buffered(3) to the two activation BlockSpecs.
    out = pl.pallas_call(
        kernel,
        out_shape=jax.ShapeDtypeStruct((1, Bp), jnp.float32),
        grid=grid,
        in_specs=[act_spec, act_spec] + w_specs + [
            pinned((1, H)),                                         # b1 row (pinned)
            pinned((1, H)),                                         # W2 row (pinned)
            pl.BlockSpec(memory_space=pltpu.MemorySpace.SMEM),      # b2 scalar in SMEM
        ],
        out_specs=pl.BlockSpec((1, bm), lambda i: (0, i)),          # lane-dense scores
        compiler_params=pltpu.CompilerParams(
            dimension_semantics=("parallel",)),
        cost_estimate=pl.CostEstimate(
            flops=flops, transcendentals=0, bytes_accessed=bytes_accessed),
    )(img_emb, art_emb, *w1_parts, b1_row, w2_row, b2_vec)
    return out[0, :B]                                               # (B,) == score.squeeze(1)


# ---------------------------------------------------------------------------- reference
def reference(img_emb, art_emb, w1, b1, w2, b2):
    x = jnp.concatenate([img_emb, art_emb], axis=1)
    h = jnp.maximum(x @ w1 + b1, 0.0)
    return (h @ w2 + b2)[:, 0]


if __name__ == "__main__":
    # Small shapes consistent with the module: emb_dim=128 -> concat dim 256, hidden 256.
    E, H = 128, 256

    key = jax.random.PRNGKey(0)
    k_img, k_art, k_w1, k_b1, k_w2, k_b2, k_img2, k_art2 = jax.random.split(key, 8)

    # torch-Linear-style init; w1 stored already transposed vs torch: (2E, H), w2: (H, 1).
    lim1 = 1.0 / jnp.sqrt(2.0 * E)
    w1 = jax.random.uniform(k_w1, (2 * E, H), minval=-lim1, maxval=lim1, dtype=jnp.float32)
    b1 = jax.random.uniform(k_b1, (H,), minval=-lim1, maxval=lim1, dtype=jnp.float32)
    lim2 = 1.0 / jnp.sqrt(float(H))
    w2 = jax.random.uniform(k_w2, (H, 1), minval=-lim2, maxval=lim2, dtype=jnp.float32)
    b2 = jax.random.uniform(k_b2, (1,), minval=-lim2, maxval=lim2, dtype=jnp.float32)

    # One-time weight layout prep (would happen at model-load time in serving).
    params = prepare_params(w1, b1, w2, b2)

    # Small-batch path (single grid step).
    B = 8
    img = jax.random.normal(k_img, (B, E), dtype=jnp.float32)
    art = jax.random.normal(k_art, (B, E), dtype=jnp.float32)
    score = scoring_model(img, art, params)
    jax.block_until_ready(score)
    ref = reference(img, art, w1, b1, w2, b2)
    assert score.shape == (B,)
    assert jnp.allclose(score, ref, atol=1e-4, rtol=1e-4), "mismatch vs reference (B=8)"

    # Larger non-multiple batch: exercises padding + multi-step 'parallel' grid.
    B2 = 384
    img2 = jax.random.normal(k_img2, (B2, E), dtype=jnp.float32)
    art2 = jax.random.normal(k_art2, (B2, E), dtype=jnp.float32)
    score2 = scoring_model(img2, art2, params)
    jax.block_until_ready(score2)
    ref2 = reference(img2, art2, w1, b1, w2, b2)
    assert score2.shape == (B2,)
    assert jnp.allclose(score2, ref2, atol=1e-4, rtol=1e-4), "mismatch vs reference (B=384)"

    print("KERNEL_OK")
</pallas_src>

<mosaic_0001>
module attributes {stable_mosaic.version = 11 : i64} {
  func.func @_scoring_kernel_fused(%arg0: i32, %arg1: memref<8x128xf32, #tpu.memory_space<vmem>>, %arg2: memref<8x128xf32, #tpu.memory_space<vmem>>, %arg3: memref<256x256xf32, #tpu.memory_space<vmem>>, %arg4: memref<1x256xf32, #tpu.memory_space<vmem>>, %arg5: memref<1x256xf32, #tpu.memory_space<vmem>>, %arg6: memref<1xf32, #tpu.memory_space<smem>>, %arg7: memref<1x8xf32, #tpu.memory_space<vmem>>) attributes {dimension_semantics = [#tpu.dimension_semantics<parallel>], iteration_bounds = array<i64: 1>, scalar_prefetch = 0 : i64, scratch_operands = 0 : i64, tpu.core_type = #tpu.core_type<tc>, window_params = [{transform_indices = @transform_0, window_bounds = array<i64: 8, 128>}, {transform_indices = @transform_1, window_bounds = array<i64: 8, 128>}, {pipeline_mode = #tpu.pipeline_mode<synchronous>, transform_indices = @transform_2, window_bounds = array<i64: 256, 256>}, {pipeline_mode = #tpu.pipeline_mode<synchronous>, transform_indices = @transform_3, window_bounds = array<i64: 1, 256>}, {pipeline_mode = #tpu.pipeline_mode<synchronous>, transform_indices = @transform_4, window_bounds = array<i64: 1, 256>}, {transform_indices = @transform_5, window_bounds = array<i64: 1>}, {transform_indices = @transform_6, window_bounds = array<i64: 1, 8>}]} {
    %c0 = arith.constant 0 : index
    %c0_0 = arith.constant 0 : index
    %0 = vector.load %arg1[%c0, %c0_0] : memref<8x128xf32, #tpu.memory_space<vmem>>, vector<8x128xf32>
    %c0_1 = arith.constant 0 : index
    %c0_2 = arith.constant 0 : index
    %1 = vector.load %arg2[%c0_1, %c0_2] : memref<8x128xf32, #tpu.memory_space<vmem>>, vector<8x128xf32>
    %2 = tpu.concatenate %0, %1 in 1 : vector<8x128xf32>, vector<8x128xf32> -> vector<8x256xf32>
    %c0_3 = arith.constant 0 : index
    %c0_4 = arith.constant 0 : index
    %3 = vector.load %arg3[%c0_3, %c0_4] : memref<256x256xf32, #tpu.memory_space<vmem>>, vector<256x256xf32>
    %cst = arith.constant dense<0.000000e+00> : vector<8x256xf32>
    %4 = tpu.matmul %2, %3, %cst {dimension_numbers = #tpu.dot_dimension_numbers<[1], [0], [0], [1], [0, 0, 1, 1], [], []>} : vector<8x256xf32>, vector<256x256xf32>, vector<8x256xf32> -> vector<8x256xf32>
    %c0_5 = arith.constant 0 : index
    %c0_6 = arith.constant 0 : index
    %5 = vector.load %arg4[%c0_5, %c0_6] : memref<1x256xf32, #tpu.memory_space<vmem>>, vector<1x256xf32>
    %6 = vector.broadcast %5 : vector<1x256xf32> to vector<8x256xf32>
    %7 = arith.addf %4, %6 : vector<8x256xf32>
    %cst_7 = arith.constant 0.000000e+00 : f32
    %8 = vector.broadcast %cst_7 : f32 to vector<8x256xf32>
    %9 = arith.maximumf %7, %8 : vector<8x256xf32>
    %c0_8 = arith.constant 0 : index
    %c0_9 = arith.constant 0 : index
    %10 = vector.load %arg5[%c0_8, %c0_9] : memref<1x256xf32, #tpu.memory_space<vmem>>, vector<1x256xf32>
    %11 = vector.broadcast %10 : vector<1x256xf32> to vector<8x256xf32>
    %12 = arith.mulf %9, %11 : vector<8x256xf32>
    %cst_10 = arith.constant dense<0.000000e+00> : vector<8xf32>
    %13 = vector.multi_reduction <add>, %12, %cst_10 [1] : vector<8x256xf32> to vector<8xf32>
    %c0_11 = arith.constant 0 : index
    %14 = memref.load %arg6[%c0_11] : memref<1xf32, #tpu.memory_space<smem>>
    %15 = vector.broadcast %14 : f32 to vector<8xf32>
    %16 = arith.addf %13, %15 : vector<8xf32>
    %c0_12 = arith.constant 0 : index
    %c0_13 = arith.constant 0 : index
    %17 = vector.load %arg7[%c0_12, %c0_13] : memref<1x8xf32, #tpu.memory_space<vmem>>, vector<1x8xf32>
    %18 = vector.shape_cast %17 : vector<1x8xf32> to vector<8xf32>
    %19 = vector.shape_cast %16 : vector<8xf32> to vector<1x8xf32>
    tpu.vector_store %arg7[%c0_12, %c0_13], %19 {strides = array<i32>} : memref<1x8xf32, #tpu.memory_space<vmem>>, vector<1x8xf32>,
    return
  }
  func.func @transform_0(%arg0: i32) -> (i32, i32) {
    %c0_i32 = arith.constant 0 : i32
    %c0_i32_0 = arith.constant 0 : i32
    return %arg0, %c0_i32 : i32, i32
  }
  func.func @transform_1(%arg0: i32) -> (i32, i32) {
    %c0_i32 = arith.constant 0 : i32
    %c0_i32_0 = arith.constant 0 : i32
    return %arg0, %c0_i32 : i32, i32
  }
  func.func @transform_2(%arg0: i32) -> (i32, i32) {
    %c0_i32 = arith.constant 0 : i32
    %c0_i32_0 = arith.constant 0 : i32
    %c0_i32_1 = arith.constant 0 : i32
    return %c0_i32, %c0_i32_0 : i32, i32
  }
  func.func @transform_3(%arg0: i32) -> (i32, i32) {
    %c0_i32 = arith.constant 0 : i32
    %c0_i32_0 = arith.constant 0 : i32
    %c0_i32_1 = arith.constant 0 : i32
    return %c0_i32, %c0_i32_0 : i32, i32
  }
  func.func @transform_4(%arg0: i32) -> (i32, i32) {
    %c0_i32 = arith.constant 0 : i32
    %c0_i32_0 = arith.constant 0 : i32
    %c0_i32_1 = arith.constant 0 : i32
    return %c0_i32, %c0_i32_0 : i32, i32
  }
  func.func @transform_5(%arg0: i32) -> i32 {
    %c0_i32 = arith.constant 0 : i32
    %c0_i32_0 = arith.constant 0 : i32
    return %c0_i32 : i32
  }
  func.func @transform_6(%arg0: i32) -> (i32, i32) {
    %c0_i32 = arith.constant 0 : i32
    %c0_i32_0 = arith.constant 0 : i32
    return %c0_i32, %arg0 : i32, i32
  }
}

</mosaic_0001>

<bundles_post_ra>
// kernel: tpu_custom_call.1
= control target key start
LH: loop header
LB: loop body
LE: loop exit
PB: predicated region body
PF: predicated region fallthrough
CT: control target
= control target key end

     0   :  { %12 = vsyncpa [#allocation4], 0  ;;  %s521_s0 = inlined_call_operand.hbm [shape: f32[8,128], index: 0, kind: input, shape index: {}]   ;;  %s522_s1 = inlined_call_operand.hbm [shape: f32[8,128], index: 1, kind: input, shape index: {}]   ;;  %s523_s2 = inlined_call_operand.hbm [shape: f32[256,256], index: 2, kind: input, shape index: {}]   ;;  %s524_s3 = inlined_call_operand.vmem [shape: f32[1,256], index: 3, kind: input, shape index: {}]   ;;  %s525_s4 = inlined_call_operand.vmem [shape: f32[1,256], index: 4, kind: input, shape index: {}]   ;;  %s526_s5 = inlined_call_operand.<no memory space> [shape: f32[1], index: 5, kind: input, shape index: {}]   ;;  %s527_s6 = inlined_call_operand.hbm [shape: f32[1,8], index: 6, kind: output, shape index: {}]  }
   0x1   :  { %13 = vsyncpa [#allocation7], 0 }
   0x2   :  { %14 = vsyncpa [#allocation5], 0  ;;  %s423_s21 = smov [#allocation6]   ;;  %s424_s23 = smov [#allocation3]  }
   0x3   :  { %s31_s22 = sshll.u32 %s423_s21, 4  ;;  %s21_s24 = sshll.u32 %s424_s23, 4  ;;  %s32_s22 = int_to_ptr.vmem [resolvable:$true] %s31_s22  ;;  %s22_s24 = int_to_ptr.vmem [resolvable:$true] %s21_s24 }
   0x4   :  { %s329_s27 = scalar_lea.hbm %s522_s1, 128 }
   0x5   :  { %p330_p0 = scmp.ne.s32.totalorder %s522_s1, %s329_s27  ;;  %p333_p1 = scmp.lt.u32.totalorder %s329_s27, %s522_s1 }
   0x7   :  { %p335_p2 = pnand %p333_p1, %p330_p0 }
   0x9   :  { %338 = shalt.err (!%p335_p2)
}
   0xa   :  { %s339_s8 = scalar_lea.vmem %s32_s22, 128  ;;  %p344_p4 = scmp.lt.s32.totalorder %s32_s22, %s32_s22 }
   0xb   :  { %p340_p3 = scmp.ne.s32.totalorder %s32_s22, %s339_s8  ;;  %p345_p5 = scmp.lt.s32.totalorder %s339_s8, %s339_s8 }
   0xd   :  { %p346_p6 = por %p345_p5, %p344_p4 }
   0xf   :  { %p347_p7 = pnand %p346_p6, %p340_p3 }
  0x11   :  { %350 = shalt.err (!%p347_p7)
}
  0x12   :  { %34 = dma.hbm_to_vmem [thread:$0]  %s522_s1, 128, %s32_s22, [#allocation7]  }
  0x13   :  { %s351_s13 = scalar_lea.hbm %s521_s0, 128 }
  0x14   :  { %p352_p8 = scmp.ne.s32.totalorder %s521_s0, %s351_s13  ;;  %p355_p9 = scmp.lt.u32.totalorder %s351_s13, %s521_s0 }
  0x16   :  { %p357_p10 = pnand %p355_p9, %p352_p8 }
  0x18   :  { %360 = shalt.err (!%p357_p10)
}
  0x19   :  { %s361_s18 = scalar_lea.vmem %s22_s24, 128  ;;  %p366_p12 = scmp.lt.s32.totalorder %s22_s24, %s22_s24 }
  0x1a   :  { %p362_p11 = scmp.ne.s32.totalorder %s22_s24, %s361_s18  ;;  %p367_p13 = scmp.lt.s32.totalorder %s361_s18, %s361_s18 }
  0x1c   :  { %p368_p0 = por %p367_p13, %p366_p12 }
  0x1e   :  { %p369_p1 = pnand %p368_p0, %p362_p11 }
  0x20   :  { %372 = shalt.err (!%p369_p1)
}
  0x21   :  { %24 = dma.hbm_to_vmem [thread:$0]  %s521_s0, 128, %s22_s24, [#allocation4]  }
  0x22   :  { %s425_s20 = smov [#allocation8]   ;;  %s373_s25 = scalar_lea.hbm %s523_s2, 8192 }
  0x23   :  { %s40_s21 = sshll.u32 %s425_s20, 4  ;;  %p374_p2 = scmp.ne.s32.totalorder %s523_s2, %s373_s25  ;;  %s41_s21 = int_to_ptr.vmem [resolvable:$true] %s40_s21 }
  0x24   :  { %p377_p3 = scmp.lt.u32.totalorder %s373_s25, %s523_s2 }
  0x26   :  { %p379_p4 = pnand %p377_p3, %p374_p2 }
  0x28   :  { %382 = shalt.err (!%p379_p4)
}
  0x29   :  { %s383_s30 = scalar_lea.vmem %s41_s21, 8192  ;;  %p388_p6 = scmp.lt.s32.totalorder %s41_s21, %s41_s21 }
  0x2a   :  { %p384_p5 = scmp.ne.s32.totalorder %s41_s21, %s383_s30  ;;  %p389_p7 = scmp.lt.s32.totalorder %s383_s30, %s383_s30 }
  0x2c   :  { %p390_p8 = por %p389_p7, %p388_p6 }
  0x2e   :  { %p391_p9 = pnand %p390_p8, %p384_p5 }
  0x30   :  { %394 = shalt.err (!%p391_p9)
}
  0x31   :  { %s426_s0 = smov 256   ;;  %s427_s24 = smov 16  }
  0x32   :  { %46 = dma.hbm_to_vmem [thread:$0]  %s523_s2, 8192, %s41_s21, [#allocation7], %s426_s0, %s426_s0, %s427_s24  }
  0x33   :  { %417 = dma.done.wait [#allocation4], 128  }
  0x34   :  { %418 = vsyncadd [#allocation4], 4294967168 }
  0x35   :  { %419 = dma.done.wait [#allocation7], 8320  }
  0x36   :  { %420 = vsyncadd [#allocation7], 4294958976  ;;  %v65_v0 = vld [vmem:[#allocation8 + $0x8] sm:$0xff]  ;;  %v67_v1 = vld [vmem:[#allocation8 + $0x18] sm:$0xff]  ;;  %vm241_vm0 = vcmask 57344  }
  0x37   :  { %v64_v2 = vld [vmem:[#allocation8] sm:$0xff]  ;;  %v259_v3 = vpack.c.bf16 %v67_v1, %v65_v0  ;;  %v66_v4 = vld [vmem:[#allocation8 + $0x10] sm:$0xff]  ;;  %v69_v5 = vld [vmem:[#allocation8 + $0x28] sm:$0xff] }
  0x38   :  { %v71_v6 = vld [vmem:[#allocation8 + $0x38] sm:$0xff]  ;;  %v261_v7 = vpack.c.bf16 %v66_v4, %v64_v2  ;;  %v68_v9 = vld [vmem:[#allocation8 + $0x20] sm:$0xff]  ;;  %v70_v10 = vld [vmem:[#allocation8 + $0x30] sm:$0xff] }
  0x39   :  { %v263_v8 = vpack.c.bf16 %v71_v6, %v69_v5  ;;  %v73_v11 = vld [vmem:[#allocation8 + $0x48] sm:$0xff]  ;;  %260 = vmatprep.subr.bf16.mxu0 %v259_v3  ;;  %v75_v12 = vld [vmem:[#allocation8 + $0x58] sm:$0xff]  ;;  %v265_v13 = vpack.c.bf16 %v70_v10, %v68_v9  ;;  %v72_v15 = vld [vmem:[#allocation8 + $0x40] sm:$0xff] }
  0x3a   :  { %262 = vmatpush1.bf16.msra.mxu0 %v261_v7  ;;  %v267_v14 = vpack.c.bf16 %v75_v12, %v73_v11  ;;  %v74_v16 = vld [vmem:[#allocation8 + $0x50] sm:$0xff]  ;;  %v77_v17 = vld [vmem:[#allocation8 + $0x68] sm:$0xff]  ;;  %v79_v18 = vld [vmem:[#allocation8 + $0x78] sm:$0xff] }
  0x3b   :  { %264 = vmatprep.subr.bf16.mxu0 %v263_v8  ;;  %v269_v19 = vpack.c.bf16 %v74_v16, %v72_v15  ;;  %v271_v20 = vpack.c.bf16 %v79_v18, %v77_v17  ;;  %v76_v21 = vld [vmem:[#allocation8 + $0x60] sm:$0xff]  ;;  %v78_v22 = vld [vmem:[#allocation8 + $0x70] sm:$0xff]  ;;  %v81_v23 = vld [vmem:[#allocation8 + $0x88] sm:$0xff] }
  0x3c   :  { %v83_v24 = vld [vmem:[#allocation8 + $0x98] sm:$0xff]  ;;  %v273_v25 = vpack.c.bf16 %v78_v22, %v76_v21  ;;  %v80_v27 = vld [vmem:[#allocation8 + $0x80] sm:$0xff]  ;;  %v82_v28 = vld [vmem:[#allocation8 + $0x90] sm:$0xff] }
  0x3d   :  { %v275_v26 = vpack.c.bf16 %v83_v24, %v81_v23  ;;  %v85_v29 = vld [vmem:[#allocation8 + $0xa8] sm:$0xff]  ;;  %v87_v30 = vld [vmem:[#allocation8 + $0xb8] sm:$0xff]  ;;  %v277_v31 = vpack.c.bf16 %v82_v28, %v80_v27  ;;  %v84_v33 = vld [vmem:[#allocation8 + $0xa0] sm:$0xff] }
  0x3e   :  { %266 = vmatpush1.bf16.msra.mxu0 %v265_v13  ;;  %v279_v32 = vpack.c.bf16 %v87_v30, %v85_v29  ;;  %v86_v34 = vld [vmem:[#allocation8 + $0xb0] sm:$0xff]  ;;  %v89_v35 = vld [vmem:[#allocation8 + $0xc8] sm:$0xff]  ;;  %v91_v36 = vld [vmem:[#allocation8 + $0xd8] sm:$0xff] }
  0x3f   :  { %268 = vmatprep.subr.bf16.mxu0 %v267_v14  ;;  %v281_v37 = vpack.c.bf16 %v86_v34, %v84_v33  ;;  %v283_v38 = vpack.c.bf16 %v91_v36, %v89_v35  ;;  %v88_v39 = vld [vmem:[#allocation8 + $0xc0] sm:$0xff]  ;;  %v90_v40 = vld [vmem:[#allocation8 + $0xd0] sm:$0xff]  ;;  %v63_v41 = vld [vmem:[#allocation6] sm:$0xff]  ;;  %v130_v34 = vlaneseq }
  0x40   :  { %v93_v42 = vld [vmem:[#allocation8 + $0xe8] sm:$0xff]  ;;  %v95_v43 = vld [vmem:[#allocation8 + $0xf8] sm:$0xff]  ;;  %204 = vmatprep.mubr.f32.mxu0 %v63_v41  ;;  %v285_v44 = vpack.c.bf16 %v90_v40, %v88_v39  ;;  %v92_v46 = vld [vmem:[#allocation8 + $0xe0] sm:$0xff] }
  0x41   :  { %v287_v45 = vpack.c.bf16 %v95_v43, %v93_v42  ;;  %v94_v47 = vld [vmem:[#allocation8 + $0xf0] sm:$0xff]  ;;  %v97_v48 = vld [vmem:[#allocation8 + $0x108] sm:$0xff]  ;;  %v99_v49 = vld [vmem:[#allocation8 + $0x118] sm:$0xff]  ;;  %v131_v35 = vshrl.u32 %v130_v34, 7 }
  0x42   :  { %270 = vmatpush1.bf16.msra.mxu0 %v269_v19  ;;  %v289_v50 = vpack.c.bf16 %v94_v47, %v92_v46  ;;  %v291_v51 = vpack.c.bf16 %v99_v49, %v97_v48  ;;  %v96_v52 = vld [vmem:[#allocation8 + $0x100] sm:$0xff]  ;;  %v98_v53 = vld [vmem:[#allocation8 + $0x110] sm:$0xff]  ;;  %v101_v54 = vld [vmem:[#allocation8 + $0x128] sm:$0xff] }
  0x43   :  { %272 = vmatprep.subr.bf16.mxu0 %v271_v20  ;;  %v103_v55 = vld [vmem:[#allocation8 + $0x138] sm:$0xff]  ;;  %v293_v56 = vpack.c.bf16 %v98_v53, %v96_v52  ;;  %v100_v58 = vld [vmem:[#allocation8 + $0x120] sm:$0xff]  ;;  %v102_v59 = vld [vmem:[#allocation8 + $0x130] sm:$0xff]  ;;  %v132_v36 = vsub.s32 0, %v131_v35  ;;  %v235_v53 = vand.u32 127, %v130_v34 }
  0x44   :  { %v295_v57 = vpack.c.bf16 %v103_v55, %v101_v54  ;;  %v105_v60 = vld [vmem:[#allocation8 + $0x148] sm:$0xff]  ;;  %v107_v61 = vld [vmem:[#allocation8 + $0x158] sm:$0xff]  ;;  %v297_v62 = vpack.c.bf16 %v102_v59, %v100_v58  ;;  %v104_v0 = vld [vmem:[#allocation8 + $0x140] sm:$0xff]  ;;  %v231_v54 = vstv %s526_s5 }
  0x45   :  { %v299_v63 = vpack.c.bf16 %v107_v61, %v105_v60  ;;  %v106_v1 = vld [vmem:[#allocation8 + $0x150] sm:$0xff]  ;;  %v109_v2 = vld [vmem:[#allocation8 + $0x168] sm:$0xff]  ;;  %v111_v3 = vld [vmem:[#allocation8 + $0x178] sm:$0xff]  ;;  %v238_v55 = vsub.s32 %v235_v53, %v131_v35 }
  0x46   :  { %274 = vmatpush1.bf16.msra.mxu0 %v273_v25  ;;  %v301_v4 = vpack.c.bf16 %v106_v1, %v104_v0  ;;  %v303_v5 = vpack.c.bf16 %v111_v3, %v109_v2  ;;  %v108_v6 = vld [vmem:[#allocation8 + $0x160] sm:$0xff]  ;;  %v110_v7 = vld [vmem:[#allocation8 + $0x170] sm:$0xff]  ;;  %v113_v8 = vld [vmem:[#allocation8 + $0x188] sm:$0xff] }
  0x47   :  { %276 = vmatprep.subr.bf16.mxu0 %v275_v26  ;;  %v115_v9 = vld [vmem:[#allocation8 + $0x198] sm:$0xff]  ;;  %v305_v10 = vpack.c.bf16 %v110_v7, %v108_v6  ;;  %v112_v12 = vld [vmem:[#allocation8 + $0x180] sm:$0xff]  ;;  %v114_v13 = vld [vmem:[#allocation8 + $0x190] sm:$0xff] }
  0x48   :  { %v307_v11 = vpack.c.bf16 %v115_v9, %v113_v8  ;;  %v117_v14 = vld [vmem:[#allocation8 + $0x1a8] sm:$0xff]  ;;  %v119_v15 = vld [vmem:[#allocation8 + $0x1b8] sm:$0xff]  ;;  %v309_v16 = vpack.c.bf16 %v114_v13, %v112_v12  ;;  %v116_v18 = vld [vmem:[#allocation8 + $0x1a0] sm:$0xff] }
  0x49   :  { %v311_v17 = vpack.c.bf16 %v119_v15, %v117_v14  ;;  %v118_v19 = vld [vmem:[#allocation8 + $0x1b0] sm:$0xff]  ;;  %v121_v20 = vld [vmem:[#allocation8 + $0x1c8] sm:$0xff]  ;;  %v123_v21 = vld [vmem:[#allocation8 + $0x1d8] sm:$0xff] }
  0x4a   :  { %278 = vmatpush1.bf16.msra.mxu0 %v277_v31  ;;  %v313_v22 = vpack.c.bf16 %v118_v19, %v116_v18  ;;  %v315_v23 = vpack.c.bf16 %v123_v21, %v121_v20  ;;  %v120_v24 = vld [vmem:[#allocation8 + $0x1c0] sm:$0xff]  ;;  %v122_v25 = vld [vmem:[#allocation8 + $0x1d0] sm:$0xff]  ;;  %v125_v26 = vld [vmem:[#allocation8 + $0x1e8] sm:$0xff] }
  0x4b   :  { %280 = vmatprep.subr.bf16.mxu0 %v279_v32  ;;  %v127_v27 = vld [vmem:[#allocation8 + $0x1f8] sm:$0xff]  ;;  %v317_v28 = vpack.c.bf16 %v122_v25, %v120_v24  ;;  %v124_v30 = vld [vmem:[#allocation8 + $0x1e0] sm:$0xff]  ;;  %v126_v31 = vld [vmem:[#allocation8 + $0x1f0] sm:$0xff] }
  0x4c   :  { %v319_v29 = vpack.c.bf16 %v127_v27, %v125_v26  ;;  %v321_v32 = vpack.c.bf16 %v126_v31, %v124_v30  ;;  %v62_v33 = vld [vmem:[#allocation3] sm:$0xff] }
  0x4d   :  { %v213_v41 = vld [vmem:[%s525_s4] sm:$0x3]  ;;  %s428_s4 = smov [#allocation9]  }
  0x4e   :  { %282 = vmatpush1.bf16.msra.mxu0 %v281_v37  ;;  %v128_v37 = vld [vmem:[%s524_s3] sm:$0x3]  ;;  %s249_s13 = sshll.u32 %s428_s4, 4  ;;  %s250_s13 = int_to_ptr.vmem [resolvable:$true] %s249_s13 }
  0x4f   :  { %284 = vmatprep.subr.bf16.mxu0 %v283_v38  ;;  %v136_v38 = vsub.s32 1, %v131_v35  ;;  %v133_v39 = vrot.slane %v128_v37, %v132_v36  ;;  %s395_s14 = scalar_lea.vmem %s250_s13, 16  ;;  %s399_s15 = scalar_lea.vmem %s250_s13, 32 }
  0x50   :  { %p396_p10 = scmp.ne.s32.totalorder %s250_s13, %s395_s14  ;;  %p400_p11 = scmp.lt.s32.totalorder %s250_s13, %s250_s13 }
  0x51   :  { %v137_v40 = vrot.slane %v128_v37, %v136_v38  ;;  %v222_v47 = vrot.slane %v213_v41, %v136_v38  ;;  %p401_p12 = scmp.lt.s32.totalorder %s399_s15, %s395_s14 }
  0x52   :  { %286 = vmatpush1.bf16.msra.mxu0 %v285_v44 }
  0x53   :  { %288 = vmatprep.subr.bf16.mxu0 %v287_v45  ;;  %v218_v45 = vrot.slane %v213_v41, %v132_v36  ;;  %p402_p13 = por %p401_p12, %p400_p11 }
  0x55   :  { %p403_p0 = pnand %p402_p13, %p396_p10 }
  0x56   :  { %290 = vmatpush1.bf16.msra.mxu0 %v289_v50 }
  0x57   :  { %292 = vmatprep.subr.bf16.mxu0 %v291_v51 }
  0x5a   :  { %294 = vmatpush1.bf16.msra.mxu0 %v293_v56 }
  0x5b   :  { %296 = vmatprep.subr.bf16.mxu0 %v295_v57 }
  0x5e   :  { %298 = vmatpush1.bf16.msra.mxu0 %v297_v62 }
  0x5f   :  { %300 = vmatprep.subr.bf16.mxu0 %v299_v63 }
  0x62   :  { %302 = vmatpush1.bf16.msra.mxu0 %v301_v4 }
  0x63   :  { %304 = vmatprep.subr.bf16.mxu0 %v303_v5 }
  0x66   :  { %306 = vmatpush1.bf16.msra.mxu0 %v305_v10 }
  0x67   :  { %308 = vmatprep.subr.bf16.mxu0 %v307_v11 }
  0x6a   :  { %310 = vmatpush1.bf16.msra.mxu0 %v309_v16 }
  0x6b   :  { %312 = vmatprep.subr.bf16.mxu0 %v311_v17 }
  0x6e   :  { %314 = vmatpush1.bf16.msra.mxu0 %v313_v22 }
  0x6f   :  { %316 = vmatprep.subr.bf16.mxu0 %v315_v23 }
  0x72   :  { %318 = vmatpush1.bf16.msra.mxu0 %v317_v28 }
  0x73   :  { %320 = vmatprep.subr.bf16.mxu0 %v319_v29 }
  0x76   :  { %322 = vmatpush1.bf16.msra.mxu0 %v321_v32 }
  0x79   :  { %205 = vmatmul.mubr.f32.vlgmr.msra.gmra.mrb[0].mxu0 %v62_v33 }
 0x14c   :  { %v206_v42 = vpop.f32.mrb[0].mxu0 }
 0x14d   :  { %v207_v43 = vadd.f32 %v206_v42, %v133_v39  ;;  %v208_v44 = vpop.f32.mrb[1].mxu0 }
 0x14e   :  { %v209_v46 = vadd.f32 %v208_v44, %v137_v40 }
 0x14f   :  { %v211_v48 = vmax.f32 %v207_v43, 0.0 }
 0x150   :  { %v212_v49 = vmax.f32 %v209_v46, 0.0 }
 0x151   :  { %v225_v50 = vmul.f32 %v218_v45, %v211_v48 }
 0x152   :  { %v226_v51 = vmul.f32 %v222_v47, %v212_v49 }
 0x154   :  { %v227_v52 = vadd.f32 %v226_v51, %v225_v50 }
 0x156   :  { %228 = vadd.xlane.f32.xlu0 %v227_v52 }
 0x1e3   :  { %v229_v56 = vpop.xlane.xlu0 %228 }
 0x1e4   :  { %v232_v57 = vadd.f32 %v231_v54, %v229_v56 }
 0x1e6   :  { %v239_v58 = vrot.slane %v232_v57, %v238_v55 }
 0x1e8   :  { %242 = vst.msk [vmem:[#allocation9] sm:$0x1] %vm241_vm0, %v239_v58 }
 0x1e9   :  { %406 = shalt.err (!%p403_p0)
}
 0x1ea   :  { %s407_s5 = scalar_lea.hbm %s527_s6, 16 }
 0x1eb   :  { %p408_p1 = scmp.ne.s32.totalorder %s527_s6, %s407_s5  ;;  %p411_p2 = scmp.lt.u32.totalorder %s407_s5, %s527_s6 }
 0x1ed   :  { %p413_p3 = pnand %p411_p2, %p408_p1 }
 0x1ef   :  { %416 = shalt.err (!%p413_p3)
}
 0x1f0   :  { %252 = dma.vmem_to_hbm [thread:$0]  %s250_s13, 16, %s527_s6, [#allocation5]  }
 0x1f1   :  { %421 = dma.done.wait [#allocation5], 16  }
 0x1f2   :  { %422 = vsyncadd [#allocation5], 4294967280 }
 0x1f3   :  { %256 = vsyncpa [#allocation4], 1 }
 0x1f4   :  { %257 = vsyncpa [#allocation7], 1 }
 0x1f5   :  { %258 = vsyncpa [#allocation5], 1 }

</bundles_post_ra>
